<compile_context>
chip_gen: v7x
topology: tpu7x:2x2x1
jax: 0.10.0
libtpu: 0.0.40
codegen_flags: <defaults>
</compile_context>

<pallas_src>
import functools

import jax
import jax.numpy as jnp
from jax.experimental import pallas as pl
from jax.experimental.pallas import tpu as pltpu

_LANES = 128
_SUBLANES = 8


def _cdiv(a, b):
    return -(-a // b)


def _round_up(a, b):
    return _cdiv(a, b) * b


def _default_num_cores():
    # 2 TensorCores per chip only on v7x; v5e/v6e are single-TC (core axis is pure overhead).
    try:
        kind = jax.devices()[0].device_kind.lower()
    except Exception:
        return 1
    return 2 if "v7" in kind else 1


def _skewed_loss_kernel(yp_ref, yt_ref, out_ref, *,
                        a_le, b_le, a_gt, b_gt, median_age,
                        loss_type, epsilon):
    s = pl.program_id(1)          # reduction ("arbitrary") axis

    @pl.when(s == 0)
    def _():
        out_ref[...] = jnp.zeros_like(out_ref)

    yp = yp_ref[0]                # (tile_rows, 128) f32
    yt = yt_ref[0]                # (tile_rows, 128) f32

    # linear_adaptive_lamda(y_true), folded into a single selected affine form
    # lam = A*yt + B with (A, B) picked per side of median_age.
    le = yt <= median_age
    lam = jnp.where(le, a_le, a_gt) * yt + jnp.where(le, b_le, b_gt)

    diff = yp - yt
    if loss_type == "L1":
        base = jnp.abs(diff)
    elif loss_type == "L2":
        base = diff * diff
    elif loss_type == "SVR":
        base = jnp.maximum(jnp.abs(diff) - epsilon, 0.0)
    else:
        raise ValueError(f"unknown loss_type {loss_type}")

    # sign(y_true - y_pred) * lam  ==  where(diff > 0, -lam, lam) wherever base != 0;
    # at diff == 0 the base is 0 for every loss type, so the branch value is irrelevant.
    loss = base * jnp.exp(jnp.where(diff > 0.0, -lam, lam))

    # Per-step cross-sublane partial reduction into the tiny resident (1, 128) accumulator.
    out_ref[...] += jnp.sum(loss, axis=0, keepdims=True)[None]


@functools.partial(
    jax.jit,
    static_argnames=("lamda_max", "lim", "median_age", "loss_type", "epsilon",
                     "num_cores", "max_tile_rows"))
def skewed_loss_ordinary(y_pred, y_true, *, lamda_max, lim, median_age,
                         loss_type="L1", epsilon=1.0,
                         num_cores=None, max_tile_rows=8192):
    """Scalar mean skewed loss (matches the PyTorch module's forward)."""
    yp = jnp.asarray(y_pred, jnp.float32).reshape(-1)
    yt = jnp.asarray(y_true, jnp.float32).reshape(-1)
    assert yp.shape == yt.shape
    n = int(yp.shape[0])
    assert n > 0

    if num_cores is None:
        num_cores = _default_num_cores()
    num_cores = max(1, int(num_cores))
    max_tile_rows = max(_SUBLANES, _round_up(int(max_tile_rows), _SUBLANES))

    # Lane-dense tiling: (num_cores, steps * tile_rows, 128).
    # Choose steps first, then tile_rows, so padding waste is bounded by a few sublane rows.
    rows = _round_up(max(_cdiv(n, _LANES), _SUBLANES), _SUBLANES)
    steps = max(1, _cdiv(rows, num_cores * max_tile_rows))
    tile_rows = _round_up(_cdiv(rows, num_cores * steps), _SUBLANES)
    rows_per_core = steps * tile_rows
    padded_n = num_cores * rows_per_core * _LANES

    if padded_n != n:
        if loss_type == "SVR":
            # Padded elements have |diff| == 0; base = max(0 - eps, 0) must be 0.
            assert epsilon >= 0.0, "zero-cost padding requires epsilon >= 0 for SVR"
        # Pad BOTH inputs with median_age: lam(pad) == 0 and diff(pad) == 0, so padded
        # elements contribute exactly 0 (no in-kernel mask, no overflow risk).
        mv = float(median_age)
        yp = jnp.pad(yp, (0, padded_n - n), constant_values=mv)
        yt = jnp.pad(yt, (0, padded_n - n), constant_values=mv)
    yp = yp.reshape(num_cores, rows_per_core, _LANES)
    yt = yt.reshape(num_cores, rows_per_core, _LANES)

    # Precompute the affine lambda coefficients (Python constants, folded into the kernel).
    lo, hi = float(lim[0]), float(lim[1])
    med = float(median_age)
    lmax = float(lamda_max)
    a_le = lmax / (med - lo)
    b_le = -lmax * med / (med - lo)
    a_gt = lmax / (hi - med)
    b_gt = -lmax * med / (hi - med)

    kernel = functools.partial(
        _skewed_loss_kernel,
        a_le=a_le, b_le=b_le, a_gt=a_gt, b_gt=b_gt,
        median_age=med, loss_type=loss_type, epsilon=float(epsilon))

    block_bytes = tile_rows * _LANES * 4
    cost = pl.CostEstimate(
        flops=10 * padded_n,
        transcendentals=padded_n,
        bytes_accessed=2 * padded_n * 4 + num_cores * _LANES * 4,
    )

    partials = pl.pallas_call(
        kernel,
        out_shape=jax.ShapeDtypeStruct((num_cores, 1, _LANES), jnp.float32),
        grid_spec=pltpu.PrefetchScalarGridSpec(
            num_scalar_prefetch=0,
            grid=(num_cores, steps),
            in_specs=[
                pl.BlockSpec((1, tile_rows, _LANES), lambda c, s: (c, s, 0)),
                pl.BlockSpec((1, tile_rows, _LANES), lambda c, s: (c, s, 0)),
            ],
            # Per-core tiny (1, 128) partial-sum row, resident across the s axis.
            out_specs=pl.BlockSpec((1, 1, _LANES), lambda c, s: (c, 0, 0)),
        ),
        compiler_params=pltpu.CompilerParams(
            dimension_semantics=("parallel", "arbitrary"),
            vmem_limit_bytes=4 * block_bytes + (8 << 20),   # 2 inputs x 2 buffers + headroom
            allow_input_fusion=[True, True],                # let XLA fuse the (rare) pad/reshape
        ),
        cost_estimate=cost,
    )(yp, yt)

    return jnp.sum(partials) * jnp.float32(1.0 / n)


def _reference(y_pred, y_true, *, lamda_max, lim, median_age, loss_type, epsilon=1.0):
    yp = jnp.asarray(y_pred, jnp.float32)
    yt = jnp.asarray(y_true, jnp.float32)
    lam_le = (1.0 - (yt - lim[0]) / (median_age - lim[0])) * (-lamda_max)
    lam_gt = ((yt - median_age) / (lim[1] - median_age)) * lamda_max
    lam = jnp.where(yt <= median_age, lam_le, lam_gt)
    diff = yp - yt
    if loss_type == "L1":
        base = jnp.abs(diff)
    elif loss_type == "L2":
        base = jnp.square(diff)
    else:
        base = jnp.maximum(jnp.abs(diff) - epsilon, 0.0)
    skew = jnp.exp(jnp.sign(yt - yp) * lam)
    return jnp.mean(base * skew)


if __name__ == "__main__":
    # Deterministic "args" configuration (mirrors module __init__).
    lamda_max = 1.0          # args.init_lambda
    lim = (0.0, 100.0)       # args.age_limits
    median_age = 50.0        # args.median_age

    key = jax.random.PRNGKey(0)

    ok = True
    # (n, num_cores, max_tile_rows): small ragged case with defaults, plus a forced
    # multi-step / dual-core-axis case to exercise padding + accumulation paths.
    cases = ((50, None, 8192), (3000, 2, 8))
    for n, num_cores, max_tile_rows in cases:
        kt, kp = jax.random.split(jax.random.fold_in(key, n))
        y_true = jax.random.uniform(kt, (n, 1), jnp.float32, minval=0.0, maxval=100.0)
        y_pred = y_true + jax.random.normal(kp, (n, 1), jnp.float32) * 5.0
        for loss_type in ("L1", "L2", "SVR"):
            out = skewed_loss_ordinary(
                y_pred, y_true,
                lamda_max=lamda_max, lim=lim, median_age=median_age,
                loss_type=loss_type, num_cores=num_cores, max_tile_rows=max_tile_rows)
            out = jax.block_until_ready(out)
            ref = _reference(
                y_pred, y_true,
                lamda_max=lamda_max, lim=lim, median_age=median_age,
                loss_type=loss_type)
            if not jnp.allclose(out, ref, rtol=1e-4, atol=1e-5):
                ok = False
                print(f"MISMATCH n={n} {loss_type}: kernel={out} ref={ref}")

    if ok:
        print("KERNEL_OK")
</pallas_src>

<mosaic_0001>
module attributes {stable_mosaic.version = 11 : i64} {
  func.func @_skewed_loss_kernel(%arg0: i32, %arg1: i32, %arg2: memref<1x8x128xf32, #tpu.memory_space<vmem>>, %arg3: memref<1x8x128xf32, #tpu.memory_space<vmem>>, %arg4: memref<1x1x128xf32, #tpu.memory_space<vmem>>) attributes {dimension_semantics = [#tpu.dimension_semantics<parallel>, #tpu.dimension_semantics<arbitrary>], iteration_bounds = array<i64: 1, 1>, scalar_prefetch = 0 : i64, scratch_operands = 0 : i64, tpu.core_type = #tpu.core_type<tc>, window_params = [{transform_indices = @transform_0, window_bounds = array<i64: 1, 8, 128>}, {transform_indices = @transform_1, window_bounds = array<i64: 1, 8, 128>}, {transform_indices = @transform_2, window_bounds = array<i64: 1, 1, 128>}]} {
    %c0_i32 = arith.constant 0 : i32
    %0 = arith.cmpi eq, %arg1, %c0_i32 : i32
    %1 = arith.extui %0 : i1 to i32
    %c0_i32_0 = arith.constant 0 : i32
    %2 = arith.cmpi ne, %1, %c0_i32_0 : i32
    scf.if %2 {
      %cst_19 = arith.constant 0.000000e+00 : f32
      %32 = vector.broadcast %cst_19 : f32 to vector<1x1x128xf32>
      %c0_20 = arith.constant 0 : index
      %c0_21 = arith.constant 0 : index
      %c0_22 = arith.constant 0 : index
      %33 = vector.load %arg4[%c0_20, %c0_21, %c0_22] : memref<1x1x128xf32, #tpu.memory_space<vmem>>, vector<1x1x128xf32>
      tpu.vector_store %arg4[%c0_20, %c0_21, %c0_22], %32 {strides = array<i32>} : memref<1x1x128xf32, #tpu.memory_space<vmem>>, vector<1x1x128xf32>,
    } else {
    }
    %c0 = arith.constant 0 : index
    %c0_1 = arith.constant 0 : index
    %c0_2 = arith.constant 0 : index
    %3 = vector.load %arg2[%c0, %c0_1, %c0_2] : memref<1x8x128xf32, #tpu.memory_space<vmem>>, vector<1x8x128xf32>
    %4 = vector.shape_cast %3 : vector<1x8x128xf32> to vector<8x128xf32>
    %c0_3 = arith.constant 0 : index
    %c0_4 = arith.constant 0 : index
    %c0_5 = arith.constant 0 : index
    %5 = vector.load %arg3[%c0_3, %c0_4, %c0_5] : memref<1x8x128xf32, #tpu.memory_space<vmem>>, vector<1x8x128xf32>
    %6 = vector.shape_cast %5 : vector<1x8x128xf32> to vector<8x128xf32>
    %cst = arith.constant 5.000000e+01 : f32
    %7 = vector.broadcast %cst : f32 to vector<8x128xf32>
    %8 = arith.cmpf ole, %6, %7 : vector<8x128xf32>
    %cst_6 = arith.constant 2.000000e-02 : f32
    %cst_7 = arith.constant 2.000000e-02 : f32
    %9 = vector.broadcast %cst_6 : f32 to vector<8x128xf32>
    %10 = vector.broadcast %cst_7 : f32 to vector<8x128xf32>
    %11 = arith.select %8, %9, %10 : vector<8x128xi1>, vector<8x128xf32>
    %12 = arith.mulf %11, %6 : vector<8x128xf32>
    %cst_8 = arith.constant -1.000000e+00 : f32
    %cst_9 = arith.constant -1.000000e+00 : f32
    %13 = vector.broadcast %cst_8 : f32 to vector<8x128xf32>
    %14 = vector.broadcast %cst_9 : f32 to vector<8x128xf32>
    %15 = arith.select %8, %13, %14 : vector<8x128xi1>, vector<8x128xf32>
    %16 = arith.addf %12, %15 : vector<8x128xf32>
    %17 = arith.subf %4, %6 : vector<8x128xf32>
    %18 = math.absf %17 : vector<8x128xf32>
    %cst_10 = arith.constant 0.000000e+00 : f32
    %19 = vector.broadcast %cst_10 : f32 to vector<8x128xf32>
    %20 = arith.cmpf ogt, %17, %19 : vector<8x128xf32>
    %cst_11 = arith.constant 0.000000e+00 : f32
    %21 = vector.broadcast %cst_11 : f32 to vector<8x128xf32>
    %22 = arith.subf %21, %16 : vector<8x128xf32>
    %23 = arith.select %20, %22, %16 : vector<8x128xi1>, vector<8x128xf32>
    %24 = math.exp %23 : vector<8x128xf32>
    %25 = arith.mulf %18, %24 : vector<8x128xf32>
    %c0_12 = arith.constant 0 : index
    %c0_13 = arith.constant 0 : index
    %c0_14 = arith.constant 0 : index
    %26 = vector.load %arg4[%c0_12, %c0_13, %c0_14] : memref<1x1x128xf32, #tpu.memory_space<vmem>>, vector<1x1x128xf32>
    %cst_15 = arith.constant dense<0.000000e+00> : vector<128xf32>
    %27 = vector.multi_reduction <add>, %25, %cst_15 [0] : vector<8x128xf32> to vector<128xf32>
    %28 = vector.shape_cast %27 : vector<128xf32> to vector<1x128xf32>
    %29 = vector.shape_cast %28 : vector<1x128xf32> to vector<1x1x128xf32>
    %30 = arith.addf %26, %29 : vector<1x1x128xf32>
    %c0_16 = arith.constant 0 : index
    %c0_17 = arith.constant 0 : index
    %c0_18 = arith.constant 0 : index
    %31 = vector.load %arg4[%c0_16, %c0_17, %c0_18] : memref<1x1x128xf32, #tpu.memory_space<vmem>>, vector<1x1x128xf32>
    tpu.vector_store %arg4[%c0_16, %c0_17, %c0_18], %30 {strides = array<i32>} : memref<1x1x128xf32, #tpu.memory_space<vmem>>, vector<1x1x128xf32>,
    return
  }
  func.func @transform_0(%arg0: i32, %arg1: i32) -> (i32, i32, i32) {
    %c0_i32 = arith.constant 0 : i32
    %c0_i32_0 = arith.constant 0 : i32
    return %arg0, %arg1, %c0_i32 : i32, i32, i32
  }
  func.func @transform_1(%arg0: i32, %arg1: i32) -> (i32, i32, i32) {
    %c0_i32 = arith.constant 0 : i32
    %c0_i32_0 = arith.constant 0 : i32
    return %arg0, %arg1, %c0_i32 : i32, i32, i32
  }
  func.func @transform_2(%arg0: i32, %arg1: i32) -> (i32, i32, i32) {
    %c0_i32 = arith.constant 0 : i32
    %c0_i32_0 = arith.constant 0 : i32
    %c0_i32_1 = arith.constant 0 : i32
    return %arg0, %c0_i32, %c0_i32_0 : i32, i32, i32
  }
}

</mosaic_0001>

<bundles_post_ra>
// kernel: skewed_loss_ordinary.2
= control target key start
LH: loop header
LB: loop body
LE: loop exit
PB: predicated region body
PF: predicated region fallthrough
CT: control target
= control target key end

     0   :  { %v15_v2 = vlaneseq  ;;  %v61_v4 = vmov 0.0   ;;  %s100_s0 = inlined_call_operand.vmem [shape: f32[50], index: 0, kind: input, shape index: {}]   ;;  %s101_s1 = inlined_call_operand.<no memory space> [shape: f32[], index: 1, kind: input, shape index: {}]   ;;  %s102_s2 = inlined_call_operand.vmem [shape: f32[50], index: 2, kind: input, shape index: {}]   ;;  %s103_s3 = inlined_call_operand.vmem [shape: f32[1,1,128], index: 3, kind: output, shape index: {}]  }
   0x1   :  { %v8_v0 = vstv %s101_s1  ;;  %v14_v1 = vld [vmem:[%s102_s2] sm:$0x1]  ;;  %32 = vst [vmem:[%s103_s3] sm:$0x1] %v61_v4 }
   0x2   :  { %v21_v3 = vld [vmem:[%s100_s0] sm:$0x1]  ;;  %vm17_vm0 = vcmp.lt.s32.totalorder %v15_v2, 50 }
   0x3   :  { %v18_v5 = vsel %vm17_vm0, %v14_v1, %v8_v0  ;;  %v25_v6 = vsel %vm17_vm0, %v21_v3, %v8_v0 }
   0x4   :  { %v35_v7 = vmul.f32 0.02, %v25_v6  ;;  %v37_v8 = vsub.f32 %v18_v5, %v25_v6 }
   0x6   :  { %v36_v9 = vadd.f32 -1.0, %v35_v7  ;;  %vm39_vm1 = vcmp.gt.f32.partialorder %v37_v8, 0.0  ;;  %v38_v13 = vand.u32 2147483647, %v37_v8 }
   0x8   :  { %v40_v10 = vsub.f32 0.0, %v36_v9  ;;  %v45_v21 = vld [vmem:[%s103_s3] sm:$0x1] }
   0xa   :  { %v41_v11 = vsel %vm39_vm1, %v40_v10, %v36_v9 }
   0xb   :  { %v42_v12 = vmul.f32 1.442695, %v41_v11 }
   0xd   :  { %59 = vpow2.f32 %v42_v12 }
  0x17   :  { %v60_v14 = vpop.eup %59 }
  0x18   :  { %v44_v15 = vmul.f32 %v60_v14, %v38_v13 }
  0x1a   :  { %v46_v16 = vrot.slane %v44_v15, 4 }
  0x1c   :  { %v47_v17 = vadd.f32 %v46_v16, %v44_v15 }
  0x1e   :  { %v48_v18 = vrot.slane %v47_v17, 2 }
  0x20   :  { %v49_v19 = vadd.f32 %v48_v18, %v47_v17 }
  0x22   :  { %v50_v20 = vrot.slane %v49_v19, 1 }
  0x24   :  { %v51_v22 = vadd.f32 %v50_v20, %v49_v19 }
  0x26   :  { %v52_v23 = vadd.f32 %v51_v22, %v45_v21 }
  0x28   :  { %53 = vst [vmem:[%s103_s3] sm:$0x1] %v52_v23 }

</bundles_post_ra>
